<compile_context>
chip_gen: v7x
topology: tpu7x:2x2x1
jax: 0.10.0
libtpu: 0.0.40
codegen_flags: <defaults>
</compile_context>

<pallas_src>
import functools

import jax
import jax.numpy as jnp
from jax import lax
from jax.experimental import pallas as pl
from jax.experimental.pallas import tpu as pltpu


_VMEM_INPUT_BUDGET = 24 * 1024 * 1024   # double-buffered input tiles + (t,t) quadrants
_VMEM_LIMIT = 48 * 1024 * 1024          # scoped VMEM limit (fits all of v5e/v6e/v7x)


def _pick_tile(b, d, itemsize):
    """Largest tile that divides the half-batch and keeps the pipeline in VMEM.

    Per grid step, VMEM holds roughly:
      4 input streams * 2 pipeline buffers * (tile, d) tiles      (inputs)
      + 4 * (tile, tile) f32 similarity quadrants                 (intermediates)
    """
    divisors = [t for t in (512, 256, 128, 64, 32, 16, 8) if b % t == 0]
    if not divisors:
        return b                       # tiny / odd half-batch: one full-dim block
    for t in divisors:                 # largest first
        if 8 * t * d * itemsize + 16 * t * t <= _VMEM_INPUT_BUDGET:
            return t
    return divisors[-1]                # nothing fits the budget: smallest divisor


def _instance_loss_kernel(zi_r_ref, zj_r_ref, zi_c_ref, zj_c_ref, out_ref,
                          m_sc, l_sc, *, tm, tn, temperature):
    i = pl.program_id(0)            # row tile (within each half)
    j = pl.program_id(1)            # column tile (within each half), reduction axis
    ncols = pl.num_programs(1)

    @pl.when(j == 0)
    def _():
        m_sc[...] = jnp.full_like(m_sc, -jnp.inf)
        l_sc[...] = jnp.zeros_like(l_sc)

    inv_t = jnp.float32(1.0 / temperature)

    zi_r = zi_r_ref[...]
    zj_r = zj_r_ref[...]
    zi_c = zi_c_ref[...]
    zj_c = zj_c_ref[...]

    # Similarity quadrant tiles on the MXU, contracting last-dim with last-dim so no
    # transpose / extra copy of the column tiles is needed.  f32 accumulation.
    dn = (((1,), (1,)), ((), ()))
    s_ii = lax.dot_general(zi_r, zi_c, dn, preferred_element_type=jnp.float32) * inv_t
    s_ij = lax.dot_general(zi_r, zj_c, dn, preferred_element_type=jnp.float32) * inv_t
    s_ji = lax.dot_general(zj_r, zi_c, dn, preferred_element_type=jnp.float32) * inv_t
    s_jj = lax.dot_general(zj_r, zj_c, dn, preferred_element_type=jnp.float32) * inv_t

    # Self-similarity diagonal only ever appears in the ii / jj quadrants (and, with
    # tm == tn, only when i == j); the select is cheap VALU filler under the MXU.
    neg_inf = jnp.float32(-1e30)
    r_ids = i * tm + lax.broadcasted_iota(jnp.int32, (tm, 1), 0)
    c_ids = j * tn + lax.broadcasted_iota(jnp.int32, (1, tn), 1)
    diag = r_ids == c_ids
    s_ii = jnp.where(diag, neg_inf, s_ii)
    s_jj = jnp.where(diag, neg_inf, s_jj)

    def online_update(m_old, l_old, a, b):
        t_max = jnp.maximum(jnp.max(a, axis=1, keepdims=True),
                            jnp.max(b, axis=1, keepdims=True))
        m_new = jnp.maximum(m_old, t_max)
        l_new = (jnp.exp(m_old - m_new) * l_old
                 + jnp.sum(jnp.exp(a - m_new), axis=1, keepdims=True)
                 + jnp.sum(jnp.exp(b - m_new), axis=1, keepdims=True))
        return m_new, l_new

    m_i, l_i = online_update(m_sc[0], l_sc[0], s_ii, s_ij)   # z_i-half rows
    m_j, l_j = online_update(m_sc[1], l_sc[1], s_ji, s_jj)   # z_j-half rows
    m_sc[0] = m_i
    l_sc[0] = l_i
    m_sc[1] = m_j
    l_sc[1] = l_j

    @pl.when(j == ncols - 1)
    def _():
        # Positive similarity for this row tile, shared by both halves:
        # pos[r] = <z_i[r], z_j[r]> / T  == sim[r, r+B] == sim[r+B, r].
        pos = jnp.sum(zi_r.astype(jnp.float32) * zj_r.astype(jnp.float32),
                      axis=1, keepdims=True) * inv_t
        out_ref[0] = (m_i + jnp.log(l_i)) - pos
        out_ref[1] = (m_j + jnp.log(l_j)) - pos


def instance_loss(z_i, z_j, batch_size, temperature):
    """Pallas equivalent of InstanceLoss.forward(z_i, z_j)."""
    z_i = z_i.reshape(batch_size, -1)
    z_j = z_j.reshape(batch_size, -1)
    B, D = z_i.shape
    N = 2 * B
    tile = _pick_tile(B, D, jnp.dtype(z_i.dtype).itemsize)
    n_blocks = B // tile

    kernel = functools.partial(
        _instance_loss_kernel, tm=tile, tn=tile, temperature=float(temperature)
    )

    per_row = pl.pallas_call(
        kernel,
        out_shape=jax.ShapeDtypeStruct((2, B, 1), jnp.float32),
        grid_spec=pltpu.PrefetchScalarGridSpec(
            num_scalar_prefetch=0,
            grid=(n_blocks, n_blocks),
            in_specs=[
                pl.BlockSpec((tile, D), lambda i, j: (i, 0)),   # z_i row tile
                pl.BlockSpec((tile, D), lambda i, j: (i, 0)),   # z_j row tile
                pl.BlockSpec((tile, D), lambda i, j: (j, 0)),   # z_i column tile
                pl.BlockSpec((tile, D), lambda i, j: (j, 0)),   # z_j column tile
            ],
            out_specs=pl.BlockSpec((2, tile, 1), lambda i, j: (0, i, 0)),
            scratch_shapes=[
                pltpu.VMEM((2, tile, 1), jnp.float32),   # running max per half
                pltpu.VMEM((2, tile, 1), jnp.float32),   # running sum per half
            ],
        ),
        compiler_params=pltpu.CompilerParams(
            dimension_semantics=("parallel", "arbitrary"),
            vmem_limit_bytes=_VMEM_LIMIT,
        ),
    )(z_i, z_j, z_i, z_j)

    # Tiny final reduction kept outside so the row axis can stay megacore-parallel.
    return jnp.sum(per_row) / N


def _reference_loss(z_i, z_j, batch_size, temperature):
    """Pure-JAX replica of the PyTorch forward (for verification)."""
    N = 2 * batch_size
    z = jnp.concatenate(
        [z_i.reshape(batch_size, -1), z_j.reshape(batch_size, -1)], axis=0
    ).astype(jnp.float32)
    sim = (z @ z.T) / temperature
    sim_i_j = jnp.diagonal(sim, offset=batch_size)
    sim_j_i = jnp.diagonal(sim, offset=-batch_size)
    positive = jnp.concatenate([sim_i_j, sim_j_i]).reshape(N, 1)

    mask = jnp.ones((N, N), dtype=bool)
    mask = mask.at[jnp.arange(N), jnp.arange(N)].set(False)
    idx = jnp.arange(batch_size)
    mask = mask.at[idx, idx + batch_size].set(False)
    mask = mask.at[idx + batch_size, idx].set(False)
    negatives = sim[mask].reshape(N, -1)

    logits = jnp.concatenate([positive, negatives], axis=1)
    lse = jax.scipy.special.logsumexp(logits, axis=1)
    loss = jnp.sum(lse - logits[:, 0])
    return loss / N


if __name__ == "__main__":
    batch_size = 8
    temperature = 0.5
    hidden = 32

    key = jax.random.PRNGKey(0)
    k1, k2 = jax.random.split(key)
    z_i = jax.random.normal(k1, (batch_size, hidden), dtype=jnp.float32)
    z_j = jax.random.normal(k2, (batch_size, hidden), dtype=jnp.float32)

    loss = jax.block_until_ready(instance_loss(z_i, z_j, batch_size, temperature))
    ref = jax.block_until_ready(_reference_loss(z_i, z_j, batch_size, temperature))

    assert jnp.allclose(loss, ref, rtol=1e-4, atol=1e-4), (loss, ref)
    print("KERNEL_OK")
</pallas_src>

<mosaic_0001>
module attributes {stable_mosaic.version = 11 : i64} {
  func.func @_instance_loss_kernel(%arg0: i32, %arg1: i32, %arg2: memref<8x32xf32, #tpu.memory_space<vmem>>, %arg3: memref<8x32xf32, #tpu.memory_space<vmem>>, %arg4: memref<8x32xf32, #tpu.memory_space<vmem>>, %arg5: memref<8x32xf32, #tpu.memory_space<vmem>>, %arg6: memref<2x8x1xf32, #tpu.memory_space<vmem>>, %arg7: memref<2x8x1xf32, #tpu.memory_space<vmem>>, %arg8: memref<2x8x1xf32, #tpu.memory_space<vmem>>) attributes {dimension_semantics = [#tpu.dimension_semantics<parallel>, #tpu.dimension_semantics<arbitrary>], iteration_bounds = array<i64: 1, 1>, scalar_prefetch = 0 : i64, scratch_operands = 2 : i64, tpu.core_type = #tpu.core_type<tc>, window_params = [{transform_indices = @transform_0, window_bounds = array<i64: 8, 32>}, {transform_indices = @transform_1, window_bounds = array<i64: 8, 32>}, {transform_indices = @transform_2, window_bounds = array<i64: 8, 32>}, {transform_indices = @transform_3, window_bounds = array<i64: 8, 32>}, {transform_indices = @transform_4, window_bounds = array<i64: 2, 8, 1>}]} {
    %c0_i32 = arith.constant 0 : i32
    %0 = arith.cmpi eq, %arg1, %c0_i32 : i32
    %1 = arith.extui %0 : i1 to i32
    %c0_i32_0 = arith.constant 0 : i32
    %2 = arith.cmpi ne, %1, %c0_i32_0 : i32
    scf.if %2 {
      %cst_52 = arith.constant 0xFF800000 : f32
      %99 = vector.broadcast %cst_52 : f32 to vector<2x8x1xf32>
      %c0_53 = arith.constant 0 : index
      %c0_54 = arith.constant 0 : index
      %c0_55 = arith.constant 0 : index
      %100 = vector.load %arg7[%c0_53, %c0_54, %c0_55] : memref<2x8x1xf32, #tpu.memory_space<vmem>>, vector<2x8x1xf32>
      tpu.vector_store %arg7[%c0_53, %c0_54, %c0_55], %99 {strides = array<i32>} : memref<2x8x1xf32, #tpu.memory_space<vmem>>, vector<2x8x1xf32>,
      %cst_56 = arith.constant 0.000000e+00 : f32
      %101 = vector.broadcast %cst_56 : f32 to vector<2x8x1xf32>
      %c0_57 = arith.constant 0 : index
      %c0_58 = arith.constant 0 : index
      %c0_59 = arith.constant 0 : index
      %102 = vector.load %arg8[%c0_57, %c0_58, %c0_59] : memref<2x8x1xf32, #tpu.memory_space<vmem>>, vector<2x8x1xf32>
      tpu.vector_store %arg8[%c0_57, %c0_58, %c0_59], %101 {strides = array<i32>} : memref<2x8x1xf32, #tpu.memory_space<vmem>>, vector<2x8x1xf32>,
    } else {
    }
    %c0 = arith.constant 0 : index
    %c0_1 = arith.constant 0 : index
    %3 = vector.load %arg2[%c0, %c0_1] : memref<8x32xf32, #tpu.memory_space<vmem>>, vector<8x32xf32>
    %c0_2 = arith.constant 0 : index
    %c0_3 = arith.constant 0 : index
    %4 = vector.load %arg3[%c0_2, %c0_3] : memref<8x32xf32, #tpu.memory_space<vmem>>, vector<8x32xf32>
    %c0_4 = arith.constant 0 : index
    %c0_5 = arith.constant 0 : index
    %5 = vector.load %arg4[%c0_4, %c0_5] : memref<8x32xf32, #tpu.memory_space<vmem>>, vector<8x32xf32>
    %c0_6 = arith.constant 0 : index
    %c0_7 = arith.constant 0 : index
    %6 = vector.load %arg5[%c0_6, %c0_7] : memref<8x32xf32, #tpu.memory_space<vmem>>, vector<8x32xf32>
    %cst = arith.constant dense<0.000000e+00> : vector<8x8xf32>
    %7 = tpu.matmul %3, %5, %cst {dimension_numbers = #tpu.dot_dimension_numbers<[1], [1], [0], [0], [0, 0, 1, 0], [], []>} : vector<8x32xf32>, vector<8x32xf32>, vector<8x8xf32> -> vector<8x8xf32>
    %cst_8 = arith.constant 2.000000e+00 : f32
    %8 = vector.broadcast %cst_8 : f32 to vector<8x8xf32>
    %9 = arith.mulf %7, %8 : vector<8x8xf32>
    %cst_9 = arith.constant dense<0.000000e+00> : vector<8x8xf32>
    %10 = tpu.matmul %3, %6, %cst_9 {dimension_numbers = #tpu.dot_dimension_numbers<[1], [1], [0], [0], [0, 0, 1, 0], [], []>} : vector<8x32xf32>, vector<8x32xf32>, vector<8x8xf32> -> vector<8x8xf32>
    %cst_10 = arith.constant 2.000000e+00 : f32
    %11 = vector.broadcast %cst_10 : f32 to vector<8x8xf32>
    %12 = arith.mulf %10, %11 : vector<8x8xf32>
    %cst_11 = arith.constant dense<0.000000e+00> : vector<8x8xf32>
    %13 = tpu.matmul %4, %5, %cst_11 {dimension_numbers = #tpu.dot_dimension_numbers<[1], [1], [0], [0], [0, 0, 1, 0], [], []>} : vector<8x32xf32>, vector<8x32xf32>, vector<8x8xf32> -> vector<8x8xf32>
    %cst_12 = arith.constant 2.000000e+00 : f32
    %14 = vector.broadcast %cst_12 : f32 to vector<8x8xf32>
    %15 = arith.mulf %13, %14 : vector<8x8xf32>
    %cst_13 = arith.constant dense<0.000000e+00> : vector<8x8xf32>
    %16 = tpu.matmul %4, %6, %cst_13 {dimension_numbers = #tpu.dot_dimension_numbers<[1], [1], [0], [0], [0, 0, 1, 0], [], []>} : vector<8x32xf32>, vector<8x32xf32>, vector<8x8xf32> -> vector<8x8xf32>
    %cst_14 = arith.constant 2.000000e+00 : f32
    %17 = vector.broadcast %cst_14 : f32 to vector<8x8xf32>
    %18 = arith.mulf %16, %17 : vector<8x8xf32>
    %c8_i32 = arith.constant 8 : i32
    %19 = arith.muli %arg0, %c8_i32 : i32
    %20 = tpu.iota {dimensions = array<i32: 0>} : vector<8x1xi32>
    %21 = vector.broadcast %19 : i32 to vector<8x1xi32>
    %22 = arith.addi %21, %20 : vector<8x1xi32>
    %c8_i32_15 = arith.constant 8 : i32
    %23 = arith.muli %arg1, %c8_i32_15 : i32
    %24 = tpu.iota {dimensions = array<i32: 1>} : vector<1x8xi32>
    %25 = vector.broadcast %23 : i32 to vector<1x8xi32>
    %26 = arith.addi %25, %24 : vector<1x8xi32>
    %27 = vector.broadcast %22 : vector<8x1xi32> to vector<8x8xi32>
    %28 = vector.broadcast %26 : vector<1x8xi32> to vector<8x8xi32>
    %29 = arith.cmpi eq, %27, %28 : vector<8x8xi32>
    %cst_16 = arith.constant -1.000000e+30 : f32
    %30 = vector.broadcast %cst_16 : f32 to vector<8x8xf32>
    %31 = arith.select %29, %30, %9 : vector<8x8xi1>, vector<8x8xf32>
    %cst_17 = arith.constant -1.000000e+30 : f32
    %32 = vector.broadcast %cst_17 : f32 to vector<8x8xf32>
    %33 = arith.select %29, %32, %18 : vector<8x8xi1>, vector<8x8xf32>
    %c0_18 = arith.constant 0 : index
    %c0_19 = arith.constant 0 : index
    %c0_20 = arith.constant 0 : index
    %34 = vector.load %arg7[%c0_18, %c0_19, %c0_20] : memref<2x8x1xf32, #tpu.memory_space<vmem>>, vector<1x8x1xf32>
    %35 = vector.shape_cast %34 : vector<1x8x1xf32> to vector<8x1xf32>
    %c0_21 = arith.constant 0 : index
    %c0_22 = arith.constant 0 : index
    %c0_23 = arith.constant 0 : index
    %36 = vector.load %arg8[%c0_21, %c0_22, %c0_23] : memref<2x8x1xf32, #tpu.memory_space<vmem>>, vector<1x8x1xf32>
    %37 = vector.shape_cast %36 : vector<1x8x1xf32> to vector<8x1xf32>
    %cst_24 = arith.constant dense<0xFF800000> : vector<8xf32>
    %38 = vector.multi_reduction <maximumf>, %31, %cst_24 [1] : vector<8x8xf32> to vector<8xf32>
    %39 = vector.shape_cast %38 : vector<8xf32> to vector<8x1xf32>
    %cst_25 = arith.constant dense<0xFF800000> : vector<8xf32>
    %40 = vector.multi_reduction <maximumf>, %12, %cst_25 [1] : vector<8x8xf32> to vector<8xf32>
    %41 = vector.shape_cast %40 : vector<8xf32> to vector<8x1xf32>
    %42 = arith.maximumf %39, %41 : vector<8x1xf32>
    %43 = arith.maximumf %35, %42 : vector<8x1xf32>
    %44 = arith.subf %35, %43 : vector<8x1xf32>
    %45 = math.exp %44 : vector<8x1xf32>
    %46 = arith.mulf %45, %37 : vector<8x1xf32>
    %47 = vector.broadcast %43 : vector<8x1xf32> to vector<8x8xf32>
    %48 = arith.subf %31, %47 : vector<8x8xf32>
    %49 = math.exp %48 : vector<8x8xf32>
    %cst_26 = arith.constant dense<0.000000e+00> : vector<8xf32>
    %50 = vector.multi_reduction <add>, %49, %cst_26 [1] : vector<8x8xf32> to vector<8xf32>
    %51 = vector.shape_cast %50 : vector<8xf32> to vector<8x1xf32>
    %52 = arith.addf %46, %51 : vector<8x1xf32>
    %53 = vector.broadcast %43 : vector<8x1xf32> to vector<8x8xf32>
    %54 = arith.subf %12, %53 : vector<8x8xf32>
    %55 = math.exp %54 : vector<8x8xf32>
    %cst_27 = arith.constant dense<0.000000e+00> : vector<8xf32>
    %56 = vector.multi_reduction <add>, %55, %cst_27 [1] : vector<8x8xf32> to vector<8xf32>
    %57 = vector.shape_cast %56 : vector<8xf32> to vector<8x1xf32>
    %58 = arith.addf %52, %57 : vector<8x1xf32>
    %c1 = arith.constant 1 : index
    %c0_28 = arith.constant 0 : index
    %c0_29 = arith.constant 0 : index
    %59 = vector.load %arg7[%c1, %c0_28, %c0_29] : memref<2x8x1xf32, #tpu.memory_space<vmem>>, vector<1x8x1xf32>
    %60 = vector.shape_cast %59 : vector<1x8x1xf32> to vector<8x1xf32>
    %c1_30 = arith.constant 1 : index
    %c0_31 = arith.constant 0 : index
    %c0_32 = arith.constant 0 : index
    %61 = vector.load %arg8[%c1_30, %c0_31, %c0_32] : memref<2x8x1xf32, #tpu.memory_space<vmem>>, vector<1x8x1xf32>
    %62 = vector.shape_cast %61 : vector<1x8x1xf32> to vector<8x1xf32>
    %cst_33 = arith.constant dense<0xFF800000> : vector<8xf32>
    %63 = vector.multi_reduction <maximumf>, %15, %cst_33 [1] : vector<8x8xf32> to vector<8xf32>
    %64 = vector.shape_cast %63 : vector<8xf32> to vector<8x1xf32>
    %cst_34 = arith.constant dense<0xFF800000> : vector<8xf32>
    %65 = vector.multi_reduction <maximumf>, %33, %cst_34 [1] : vector<8x8xf32> to vector<8xf32>
    %66 = vector.shape_cast %65 : vector<8xf32> to vector<8x1xf32>
    %67 = arith.maximumf %64, %66 : vector<8x1xf32>
    %68 = arith.maximumf %60, %67 : vector<8x1xf32>
    %69 = arith.subf %60, %68 : vector<8x1xf32>
    %70 = math.exp %69 : vector<8x1xf32>
    %71 = arith.mulf %70, %62 : vector<8x1xf32>
    %72 = vector.broadcast %68 : vector<8x1xf32> to vector<8x8xf32>
    %73 = arith.subf %15, %72 : vector<8x8xf32>
    %74 = math.exp %73 : vector<8x8xf32>
    %cst_35 = arith.constant dense<0.000000e+00> : vector<8xf32>
    %75 = vector.multi_reduction <add>, %74, %cst_35 [1] : vector<8x8xf32> to vector<8xf32>
    %76 = vector.shape_cast %75 : vector<8xf32> to vector<8x1xf32>
    %77 = arith.addf %71, %76 : vector<8x1xf32>
    %78 = vector.broadcast %68 : vector<8x1xf32> to vector<8x8xf32>
    %79 = arith.subf %33, %78 : vector<8x8xf32>
    %80 = math.exp %79 : vector<8x8xf32>
    %cst_36 = arith.constant dense<0.000000e+00> : vector<8xf32>
    %81 = vector.multi_reduction <add>, %80, %cst_36 [1] : vector<8x8xf32> to vector<8xf32>
    %82 = vector.shape_cast %81 : vector<8xf32> to vector<8x1xf32>
    %83 = arith.addf %77, %82 : vector<8x1xf32>
    %c0_37 = arith.constant 0 : index
    %c0_38 = arith.constant 0 : index
    %c0_39 = arith.constant 0 : index
    %84 = vector.load %arg7[%c0_37, %c0_38, %c0_39] : memref<2x8x1xf32, #tpu.memory_space<vmem>>, vector<1x8x1xf32>
    %85 = vector.shape_cast %84 : vector<1x8x1xf32> to vector<8x1xf32>
    %86 = vector.shape_cast %43 : vector<8x1xf32> to vector<1x8x1xf32>
    tpu.vector_store %arg7[%c0_37, %c0_38, %c0_39], %86 {strides = array<i32>} : memref<2x8x1xf32, #tpu.memory_space<vmem>>, vector<1x8x1xf32>,
    %c0_40 = arith.constant 0 : index
    %c0_41 = arith.constant 0 : index
    %c0_42 = arith.constant 0 : index
    %87 = vector.load %arg8[%c0_40, %c0_41, %c0_42] : memref<2x8x1xf32, #tpu.memory_space<vmem>>, vector<1x8x1xf32>
    %88 = vector.shape_cast %87 : vector<1x8x1xf32> to vector<8x1xf32>
    %89 = vector.shape_cast %58 : vector<8x1xf32> to vector<1x8x1xf32>
    tpu.vector_store %arg8[%c0_40, %c0_41, %c0_42], %89 {strides = array<i32>} : memref<2x8x1xf32, #tpu.memory_space<vmem>>, vector<1x8x1xf32>,
    %c1_43 = arith.constant 1 : index
    %c0_44 = arith.constant 0 : index
    %c0_45 = arith.constant 0 : index
    %90 = vector.load %arg7[%c1_43, %c0_44, %c0_45] : memref<2x8x1xf32, #tpu.memory_space<vmem>>, vector<1x8x1xf32>
    %91 = vector.shape_cast %90 : vector<1x8x1xf32> to vector<8x1xf32>
    %92 = vector.shape_cast %68 : vector<8x1xf32> to vector<1x8x1xf32>
    tpu.vector_store %arg7[%c1_43, %c0_44, %c0_45], %92 {strides = array<i32>} : memref<2x8x1xf32, #tpu.memory_space<vmem>>, vector<1x8x1xf32>,
    %c1_46 = arith.constant 1 : index
    %c0_47 = arith.constant 0 : index
    %c0_48 = arith.constant 0 : index
    %93 = vector.load %arg8[%c1_46, %c0_47, %c0_48] : memref<2x8x1xf32, #tpu.memory_space<vmem>>, vector<1x8x1xf32>
    %94 = vector.shape_cast %93 : vector<1x8x1xf32> to vector<8x1xf32>
    %95 = vector.shape_cast %83 : vector<8x1xf32> to vector<1x8x1xf32>
    tpu.vector_store %arg8[%c1_46, %c0_47, %c0_48], %95 {strides = array<i32>} : memref<2x8x1xf32, #tpu.memory_space<vmem>>, vector<1x8x1xf32>,
    %c0_i32_49 = arith.constant 0 : i32
    %96 = arith.cmpi eq, %arg1, %c0_i32_49 : i32
    %97 = arith.extui %96 : i1 to i32
    %cst_50 = arith.constant 2.000000e+00 : f32
    %c0_i32_51 = arith.constant 0 : i32
    %98 = arith.cmpi ne, %97, %c0_i32_51 : i32
    scf.if %98 {
      %99 = arith.mulf %3, %4 : vector<8x32xf32>
      %cst_52 = arith.constant dense<0.000000e+00> : vector<8xf32>
      %100 = vector.multi_reduction <add>, %99, %cst_52 [1] : vector<8x32xf32> to vector<8xf32>
      %101 = vector.shape_cast %100 : vector<8xf32> to vector<8x1xf32>
      %102 = vector.broadcast %cst_50 : f32 to vector<8x1xf32>
      %103 = arith.mulf %101, %102 : vector<8x1xf32>
      %104 = math.log %58 : vector<8x1xf32>
      %105 = arith.addf %43, %104 : vector<8x1xf32>
      %106 = arith.subf %105, %103 : vector<8x1xf32>
      %c0_53 = arith.constant 0 : index
      %c0_54 = arith.constant 0 : index
      %c0_55 = arith.constant 0 : index
      %107 = vector.load %arg6[%c0_53, %c0_54, %c0_55] : memref<2x8x1xf32, #tpu.memory_space<vmem>>, vector<1x8x1xf32>
      %108 = vector.shape_cast %107 : vector<1x8x1xf32> to vector<8x1xf32>
      %109 = vector.shape_cast %106 : vector<8x1xf32> to vector<1x8x1xf32>
      tpu.vector_store %arg6[%c0_53, %c0_54, %c0_55], %109 {strides = array<i32>} : memref<2x8x1xf32, #tpu.memory_space<vmem>>, vector<1x8x1xf32>,
      %110 = math.log %83 : vector<8x1xf32>
      %111 = arith.addf %68, %110 : vector<8x1xf32>
      %112 = arith.subf %111, %103 : vector<8x1xf32>
      %c1_56 = arith.constant 1 : index
      %c0_57 = arith.constant 0 : index
      %c0_58 = arith.constant 0 : index
      %113 = vector.load %arg6[%c1_56, %c0_57, %c0_58] : memref<2x8x1xf32, #tpu.memory_space<vmem>>, vector<1x8x1xf32>
      %114 = vector.shape_cast %113 : vector<1x8x1xf32> to vector<8x1xf32>
      %115 = vector.shape_cast %112 : vector<8x1xf32> to vector<1x8x1xf32>
      tpu.vector_store %arg6[%c1_56, %c0_57, %c0_58], %115 {strides = array<i32>} : memref<2x8x1xf32, #tpu.memory_space<vmem>>, vector<1x8x1xf32>,
    } else {
    }
    return
  }
  func.func @transform_0(%arg0: i32, %arg1: i32) -> (i32, i32) {
    %c0_i32 = arith.constant 0 : i32
    %c0_i32_0 = arith.constant 0 : i32
    return %arg0, %c0_i32 : i32, i32
  }
  func.func @transform_1(%arg0: i32, %arg1: i32) -> (i32, i32) {
    %c0_i32 = arith.constant 0 : i32
    %c0_i32_0 = arith.constant 0 : i32
    return %arg0, %c0_i32 : i32, i32
  }
  func.func @transform_2(%arg0: i32, %arg1: i32) -> (i32, i32) {
    %c0_i32 = arith.constant 0 : i32
    %c0_i32_0 = arith.constant 0 : i32
    return %arg1, %c0_i32 : i32, i32
  }
  func.func @transform_3(%arg0: i32, %arg1: i32) -> (i32, i32) {
    %c0_i32 = arith.constant 0 : i32
    %c0_i32_0 = arith.constant 0 : i32
    return %arg1, %c0_i32 : i32, i32
  }
  func.func @transform_4(%arg0: i32, %arg1: i32) -> (i32, i32, i32) {
    %c0_i32 = arith.constant 0 : i32
    %c0_i32_0 = arith.constant 0 : i32
    %c0_i32_1 = arith.constant 0 : i32
    return %c0_i32, %arg0, %c0_i32_0 : i32, i32, i32
  }
}

</mosaic_0001>

<bundles_post_ra>
// kernel: tpu_custom_call.1
= control target key start
LH: loop header
LB: loop body
LE: loop exit
PB: predicated region body
PF: predicated region fallthrough
CT: control target
= control target key end

     0   :  { %9 = vsyncpa [#allocation5], 0  ;;  %s738_s0 = inlined_call_operand.hbm [shape: f32[8,32], index: 0, kind: input, shape index: {}]   ;;  %s739_s1 = inlined_call_operand.hbm [shape: f32[8,32], index: 1, kind: input, shape index: {}]   ;;  %s740_s2 = inlined_call_operand.hbm [shape: f32[8,32], index: 2, kind: input, shape index: {}]   ;;  %s741_s3 = inlined_call_operand.vmem [shape: f32[8,32], index: 3, kind: input, shape index: {}]   ;;  %s742_s4 = inlined_call_operand.vmem [shape: f32[2,8,1], index: 4, kind: output, shape index: {}]  }
   0x1   :  { %10 = vsyncpa [#allocation7], 0  ;;  %s606_s15 = smov [#allocation6]   ;;  %s607_s17 = smov [#allocation4]  }
   0x2   :  { %s27_s16 = sshll.u32 %s606_s15, 4  ;;  %s17_s18 = sshll.u32 %s607_s17, 4  ;;  %s28_s16 = int_to_ptr.vmem [resolvable:$true] %s27_s16  ;;  %s18_s18 = int_to_ptr.vmem [resolvable:$true] %s17_s18 }
   0x3   :  { %s536_s21 = scalar_lea.hbm %s739_s1, 128 }
   0x4   :  { %p537_p0 = scmp.ne.s32.totalorder %s739_s1, %s536_s21  ;;  %p540_p1 = scmp.lt.u32.totalorder %s536_s21, %s739_s1 }
   0x6   :  { %p542_p2 = pnand %p540_p1, %p537_p0 }
   0x8   :  { %545 = shalt.err (!%p542_p2)
}
   0x9   :  { %s546_s26 = scalar_lea.vmem %s28_s16, 128  ;;  %p551_p4 = scmp.lt.s32.totalorder %s28_s16, %s28_s16 }
   0xa   :  { %p547_p3 = scmp.ne.s32.totalorder %s28_s16, %s546_s26  ;;  %p552_p5 = scmp.lt.s32.totalorder %s546_s26, %s546_s26 }
   0xc   :  { %p553_p6 = por %p552_p5, %p551_p4 }
   0xe   :  { %p554_p7 = pnand %p553_p6, %p547_p3 }
  0x10   :  { %557 = shalt.err (!%p554_p7)
}
  0x11   :  { %30 = dma.hbm_to_vmem [thread:$0]  %s739_s1, 128, %s28_s16, [#allocation7]  }
  0x12   :  { %s558_s5 = scalar_lea.hbm %s738_s0, 128 }
  0x13   :  { %p559_p8 = scmp.ne.s32.totalorder %s738_s0, %s558_s5  ;;  %p562_p9 = scmp.lt.u32.totalorder %s558_s5, %s738_s0 }
  0x15   :  { %p564_p10 = pnand %p562_p9, %p559_p8 }
  0x17   :  { %567 = shalt.err (!%p564_p10)
}
  0x18   :  { %s568_s10 = scalar_lea.vmem %s18_s18, 128  ;;  %p573_p12 = scmp.lt.s32.totalorder %s18_s18, %s18_s18 }
  0x19   :  { %p569_p11 = scmp.ne.s32.totalorder %s18_s18, %s568_s10  ;;  %p574_p13 = scmp.lt.s32.totalorder %s568_s10, %s568_s10 }
  0x1b   :  { %p575_p0 = por %p574_p13, %p573_p12 }
  0x1d   :  { %p576_p1 = pnand %p575_p0, %p569_p11 }
  0x1f   :  { %579 = shalt.err (!%p576_p1)
}
  0x20   :  { %20 = dma.hbm_to_vmem [thread:$0]  %s738_s0, 128, %s18_s18, [#allocation5]  }
  0x21   :  { %s608_s12 = smov [#allocation8]   ;;  %s580_s16 = scalar_lea.hbm %s740_s2, 128 }
  0x22   :  { %s37_s13 = sshll.u32 %s608_s12, 4  ;;  %p581_p2 = scmp.ne.s32.totalorder %s740_s2, %s580_s16  ;;  %s38_s13 = int_to_ptr.vmem [resolvable:$true] %s37_s13 }
  0x23   :  { %p584_p3 = scmp.lt.u32.totalorder %s580_s16, %s740_s2 }
  0x25   :  { %p586_p4 = pnand %p584_p3, %p581_p2 }
  0x27   :  { %589 = shalt.err (!%p586_p4)
}
  0x28   :  { %s590_s22 = scalar_lea.vmem %s38_s13, 128  ;;  %p595_p6 = scmp.lt.s32.totalorder %s38_s13, %s38_s13 }
  0x29   :  { %p591_p5 = scmp.ne.s32.totalorder %s38_s13, %s590_s22  ;;  %p596_p7 = scmp.lt.s32.totalorder %s590_s22, %s590_s22 }
  0x2b   :  { %p597_p8 = por %p596_p7, %p595_p6 }
  0x2d   :  { %p598_p9 = pnand %p597_p8, %p591_p5 }
  0x2f   :  { %601 = shalt.err (!%p598_p9)
}
  0x30   :  { %40 = dma.hbm_to_vmem [thread:$0]  %s740_s2, 128, %s38_s13, [#allocation7]  }
  0x31   :  { %602 = dma.done.wait [#allocation5], 128  }
  0x32   :  { %603 = vsyncadd [#allocation5], 4294967168 }
  0x33   :  { %604 = dma.done.wait [#allocation7], 256  }
  0x34   :  { %605 = vsyncadd [#allocation7], 4294967040  ;;  %v609_v0 = vmov 0.0   ;;  %vm610_vm0 = vmmov 0   ;;  %vm65_vm1 = vcmask 261120   ;;  %v63_v1 = vld [vmem:[#allocation8] sm:$0xff]  ;;  %v363_v5 = vlaneseq }
  0x35   :  { %491 = vmatprep.subr.mxu0 %v609_v0  ;;  %493 = vmatprep.mubr.msk.f32.mxu0 %vm610_vm0, %v609_v0  ;;  %v64_v2 = vld [vmem:[%s741_s3] sm:$0xff]  ;;  %v680_v3 = vld [vmem:[#allocation4] sm:$0xff]  ;;  %v689_v4 = vld [vmem:[#allocation6] sm:$0xff]  ;;  %vm377_vm3 = vcmask 64512   ;;  %vm56_vm4 = vcmask 7168   ;;  %v611_v26 = vmov -inf  }
  0x36   :  { %496 = vmatprep.subr.mxu1 %v609_v0  ;;  %498 = vmatprep.mubr.msk.f32.mxu1 %vm610_vm0, %v609_v0  ;;  %v364_v6 = vshrl.u32 %v363_v5, 7  ;;  %v369_v7 = vand.u32 127, %v363_v5  ;;  %57 = vst.msk [vmem:[#allocation2] sm:$0xff] %vm56_vm4, %v611_v26  ;;  %58 = vst.msk [vmem:[#allocation2 + $0x8] sm:$0xff] %vm56_vm4, %v611_v26  ;;  %v612_v27 = vmov 0   ;;  %v452_v55 = vmul.f32 %v689_v4, %v680_v3 }
  0x37   :  { %492 = vmatpush3.xpose.msk.msra.mxu0 %vm65_vm1, %v63_v1  ;;  %497 = vmatpush3.xpose.msk.msra.mxu1 %vm65_vm1, %v64_v2  ;;  %59 = vst.msk [vmem:[#allocation3] sm:$0xff] %vm56_vm4, %v609_v0  ;;  %60 = vst.msk [vmem:[#allocation3 + $0x8] sm:$0xff] %vm56_vm4, %v609_v0 }
  0x38   :  { %501 = vmatprep.subr.mxu0 %v609_v0  ;;  %506 = vmatprep.subr.mxu1 %v609_v0  ;;  %vm372_vm2 = vcmp.eq.s32.totalorder %v364_v6, %v369_v7  ;;  %v453_v57 = vsel %vm65_vm1, %v452_v55, 0.0 }
  0x39   :  { %518 = vset.pattern.permute.xlu0 %v612_v27  ;;  %519 = vset.pattern.permute.xlu1 %v612_v27 }
  0x3a   :  { %494 = vmatmul.mubr.msk.f32.vlgmr.msra.gmra.mrb[0].mxu0 %vm65_vm1, %v680_v3  ;;  %499 = vmatmul.mubr.msk.f32.vlgmr.msra.gmra.mrb[0].mxu1 %vm65_vm1, %v680_v3 }
  0x3b   :  { %502 = vmatpush3.xpose.msk.msra.mxu0 %vm65_vm1, %v63_v1  ;;  %503 = vmatprep.mubr.msk.f32.mxu0 %vm610_vm0, %v609_v0 }
  0x3c   :  { %507 = vmatpush3.xpose.msk.msra.mxu1 %vm65_vm1, %v64_v2  ;;  %508 = vmatprep.mubr.msk.f32.mxu1 %vm610_vm0, %v609_v0 }
  0x3d   :  { %v375_v31 = vld [vmem:[#allocation2] sm:$0xff]  ;;  %v410_v35 = vld [vmem:[#allocation2 + $0x8] sm:$0xff] }
  0x3e   :  { %504 = vmatmul.mubr.msk.f32.vlgmr.msra.gmra.mrb[2].mxu0 %vm65_vm1, %v689_v4  ;;  %v376_v63 = vld [vmem:[#allocation3] sm:$0xff]  ;;  %v412_v3 = vld [vmem:[#allocation3 + $0x8] sm:$0xff] }
  0x3f   :  { %509 = vmatmul.mubr.msk.f32.vlgmr.msra.gmra.mrb[2].mxu1 %vm65_vm1, %v689_v4 }
 0x10d   :  { %v138_v8 = vpop.f32.mrb[0].mxu0  ;;  %v212_v9 = vpop.f32.mrb[0].mxu1 }
 0x10e   :  { %v142_v10 = vmul.f32 2.0, %v138_v8  ;;  %v495_v11 = vpop.f32.mrb[1].mxu0  ;;  %v500_v12 = vpop.f32.mrb[1].mxu1  ;;  %v216_v13 = vmul.f32 2.0, %v212_v9 }
 0x110   :  { %v373_v14 = vsel %vm372_vm2, -1e+30, %v142_v10  ;;  %v381_v21 = vsel %vm377_vm3, %v216_v13, -inf }
 0x111   :  { %v286_v15 = vpop.f32.mrb[2].mxu0  ;;  %v378_v16 = vsel %vm377_vm3, %v373_v14, -inf }
 0x112   :  { %v290_v17 = vmul.f32 2.0, %v286_v15  ;;  %379 = vmax.xlane.f32.xlu0 %v378_v16  ;;  %v505_v18 = vpop.f32.mrb[3].mxu0  ;;  %v357_v19 = vpop.f32.mrb[2].mxu1 }
 0x113   :  { %v361_v20 = vmul.f32 2.0, %v357_v19  ;;  %v510_v22 = vpop.f32.mrb[3].mxu1 }
 0x114   :  { %v413_v23 = vsel %vm377_vm3, %v290_v17, -inf }
 0x115   :  { %414 = vmax.xlane.f32.xlu1 %v413_v23  ;;  %v374_v24 = vsel %vm372_vm2, -1e+30, %v361_v20 }
 0x116   :  { %382 = vmax.xlane.f32.xlu0 %v381_v21  ;;  %v416_v25 = vsel %vm377_vm3, %v374_v24, -inf }
 0x119   :  { %417 = vmax.xlane.f32.xlu1 %v416_v25 }
 0x19f   :  { %v380_v28 = vpop.xlane.xlu0 %379 }
 0x1a2   :  { %v415_v29 = vpop.xlane.xlu1 %414 }
 0x1a3   :  { %v383_v30 = vpop.xlane.xlu0 %382 }
 0x1a4   :  { %v384_v32 = vmax.f32 %v380_v28, %v383_v30 }
 0x1a6   :  { %v707_v33 = vmax.f32 %v375_v31, %v384_v32  ;;  %v418_v34 = vpop.xlane.xlu1 %417 }
 0x1a7   :  { %v419_v36 = vmax.f32 %v415_v29, %v418_v34 }
 0x1a8   :  { %445 = vst.msk [vmem:[#allocation2] sm:$0xff] %vm56_vm4, %v707_v33  ;;  %392 = vperm.xlu0 %518, %v707_v33   ;;  %v386_v58 = vsub.f32 %v375_v31, %v707_v33 }
 0x1a9   :  { %v712_v37 = vmax.f32 %v410_v35, %v419_v36 }
 0x1aa   :  { %v387_v59 = vmul.f32 1.442695, %v386_v58 }
 0x1ab   :  { %447 = vst.msk [vmem:[#allocation2 + $0x8] sm:$0xff] %vm56_vm4, %v712_v37  ;;  %427 = vperm.xlu1 %519, %v712_v37   ;;  %v421_v60 = vsub.f32 %v410_v35, %v712_v37 }
 0x1ad   :  { %v422_v61 = vmul.f32 1.442695, %v421_v60 }
 0x227   :  { %v393_v38 = vpop.permute.xlu0 %392 }
 0x228   :  { %v395_v39 = vsub.f32 %v373_v14, %v393_v38  ;;  %v402_v40 = vsub.f32 %v216_v13, %v393_v38 }
 0x22a   :  { %v396_v41 = vmul.f32 1.442695, %v395_v39  ;;  %v403_v42 = vmul.f32 1.442695, %v402_v40  ;;  %v428_v43 = vpop.permute.xlu1 %427 }
 0x22b   :  { %v430_v44 = vsub.f32 %v290_v17, %v428_v43  ;;  %v437_v45 = vsub.f32 %v374_v24, %v428_v43 }
 0x22c   :  { %520 = vpow2.f32 %v396_v41 }
 0x22d   :  { %v431_v46 = vmul.f32 1.442695, %v430_v44  ;;  %522 = vpow2.f32 %v403_v42  ;;  %v438_v47 = vmul.f32 1.442695, %v437_v45 }
 0x22f   :  { %524 = vpow2.f32 %v431_v46 }
 0x230   :  { %526 = vpow2.f32 %v438_v47 }
 0x231   :  { %528 = vpow2.f32 %v387_v59 }
 0x232   :  { %530 = vpow2.f32 %v422_v61 }
 0x236   :  { %v521_v48 = vpop.eup %520 }
 0x237   :  { %v398_v49 = vsel %vm377_vm3, %v521_v48, 0.0  ;;  %v523_v50 = vpop.eup %522 }
 0x238   :  { %399 = vadd.xlane.f32.xlu1 %v398_v49  ;;  %v405_v53 = vsel %vm377_vm3, %v523_v50, 0.0 }
 0x239   :  { %v525_v51 = vpop.eup %524 }
 0x23a   :  { %v433_v52 = vsel %vm377_vm3, %v525_v51, 0.0  ;;  %v527_v54 = vpop.eup %526 }
 0x23b   :  { %434 = vadd.xlane.f32.xlu0 %v433_v52  ;;  %v440_v56 = vsel %vm377_vm3, %v527_v54, 0.0  ;;  %v529_v62 = vpop.eup %528 }
 0x23c   :  { %406 = vadd.xlane.f32.xlu1 %v405_v53  ;;  %v389_v1 = vmul.f32 %v529_v62, %v376_v63  ;;  %v531_v2 = vpop.eup %530 }
 0x23d   :  { %v424_v7 = vmul.f32 %v531_v2, %v412_v3 }
 0x240   :  { %441 = vadd.xlane.f32.xlu1 %v440_v56 }
 0x244   :  { %454 = vadd.xlane.f32.xlu1 %v453_v57 }
 0x2c5   :  { %v400_v0 = vpop.xlane.xlu1 %399 }
 0x2c6   :  { %v401_v4 = vadd.f32 %v400_v0, %v389_v1 }
 0x2c8   :  { %v435_v5 = vpop.xlane.xlu0 %434 }
 0x2c9   :  { %v407_v6 = vpop.xlane.xlu1 %406  ;;  %v436_v9 = vadd.f32 %v435_v5, %v424_v7 }
 0x2ca   :  { %v408_v8 = vadd.f32 %v407_v6, %v401_v4 }
 0x2cc   :  { %446 = vst.msk [vmem:[#allocation3] sm:$0xff] %vm56_vm4, %v408_v8  ;;  %532 = vlog2.f32 %v408_v8 }
 0x2cd   :  { %v442_v10 = vpop.xlane.xlu1 %441 }
 0x2ce   :  { %v443_v11 = vadd.f32 %v442_v10, %v436_v9 }
 0x2d0   :  { %448 = vst.msk [vmem:[#allocation3 + $0x8] sm:$0xff] %vm56_vm4, %v443_v11  ;;  %534 = vlog2.f32 %v443_v11 }
 0x2d1   :  { %v455_v12 = vpop.xlane.xlu1 %454 }
 0x2d2   :  { %v456_v15 = vmul.f32 2.0, %v455_v12 }
 0x2d6   :  { %v533_v13 = vpop.eup %532 }
 0x2d7   :  { %v458_v14 = vmul.f32 0.6931472, %v533_v13 }
 0x2d9   :  { %v459_v16 = vadd.f32 %v458_v14, %v707_v33 }
 0x2da   :  { %v535_v17 = vpop.eup %534 }
 0x2db   :  { %v463_v18 = vmul.f32 0.6931472, %v535_v17  ;;  %v460_v19 = vsub.f32 %v459_v16, %v456_v15 }
 0x2dd   :  { %461 = vst.msk [vmem:[%s742_s4] sm:$0xff] %vm56_vm4, %v460_v19  ;;  %v464_v20 = vadd.f32 %v463_v18, %v712_v37 }
 0x2df   :  { %v465_v21 = vsub.f32 %v464_v20, %v456_v15 }
 0x2e1   :  { %482 = vst.msk [vmem:[%s742_s4 + $0x8] sm:$0xff] %vm56_vm4, %v465_v21 }
 0x2e2   :  { %472 = vsyncpa [#allocation5], 1 }
 0x2e3   :  { %473 = vsyncpa [#allocation7], 1 }

</bundles_post_ra>
